<compile_context>
chip_gen: v7x
topology: tpu7x:2x2x1
jax: 0.10.0
libtpu: 0.0.40
codegen_flags: <defaults>
</compile_context>

<pallas_src>
import functools

import jax
import jax.numpy as jnp
from jax import lax
from jax.experimental import pallas as pl
from jax.experimental.pallas import tpu as pltpu


def _flash_kernel(q_ref, k_ref, v_ref, amask_ref, wo_ref, bo_ref,
                  out_ref,
                  m_scr, l_scr, acc_scr,
                  *, causal, apply_mask):
    H = q_ref.shape[1]
    tq = q_ref.shape[2]
    Dh = q_ref.shape[3]
    tk = k_ref.shape[2]
    qi = pl.program_id(1)
    ki = pl.program_id(2)
    nk = pl.num_programs(2)
    cdtype = q_ref.dtype                     # MXU operand dtype (bf16)

    @pl.when(ki == 0)
    def _init():
        m_scr[...] = jnp.full_like(m_scr, -jnp.inf)
        l_scr[...] = jnp.zeros_like(l_scr)
        acc_scr[...] = jnp.zeros_like(acc_scr)

    def _block(mask_causal):
        q = q_ref[0]                          # (H, tq, Dh), scale folded in
        k = k_ref[0]                          # (H, tk, Dh)
        v = v_ref[0]                          # (H, tk, Dh)

        # Head-batched QK^T (NT form, contraction over Dh).
        s = jnp.einsum('hqd,hkd->hqk', q, k,
                       preferred_element_type=jnp.float32)      # (H, tq, tk)

        if mask_causal:                       # only tiles straddling diagonal
            qpos = qi * tq + lax.broadcasted_iota(jnp.int32, (1, tq, tk), 1)
            kpos = ki * tk + lax.broadcasted_iota(jnp.int32, (1, tq, tk), 2)
            s = jnp.where(kpos > qpos, jnp.float32(-1e9), s)
        if apply_mask:
            s = s + amask_ref[0]                                # (1, tk) bcast

        # Online softmax update.
        m_prev = m_scr[...]
        m_new = jnp.maximum(m_prev, jnp.max(s, axis=-1, keepdims=True))
        alpha = jnp.exp(m_prev - m_new)
        p = jnp.exp(s - m_new)
        l_scr[...] = alpha * l_scr[...] + jnp.sum(p, axis=-1, keepdims=True)
        acc_scr[...] = alpha * acc_scr[...] + jnp.einsum(
            'hqk,hkd->hqd', p.astype(cdtype), v,
            preferred_element_type=jnp.float32)
        m_scr[...] = m_new

    if causal:
        run = ki * tk <= qi * tq + (tq - 1)       # tile not fully above diag
        straddle = ki * tk + (tk - 1) > qi * tq   # tile crosses the diagonal

        @pl.when(jnp.logical_and(run, straddle))
        def _():
            _block(True)

        @pl.when(jnp.logical_and(run, jnp.logical_not(straddle)))
        def _():
            _block(False)
    else:
        _block(False)

    @pl.when(ki == nk - 1)
    def _finalize():
        inv_l = pl.reciprocal(l_scr[...], approx=True)        # (H, tq, 1)
        merged = acc_scr[...] * inv_l                         # (H, tq, Dh) f32
        merged = jnp.transpose(merged, (1, 0, 2)).reshape(tq, H * Dh)
        out = jnp.dot(merged.astype(cdtype), wo_ref[...],
                      preferred_element_type=jnp.float32) + bo_ref[...]
        out_ref[0] = out.astype(out_ref.dtype)


def _tile_and_pad(length, preferred):
    """Pick a seq tile and (possibly padded) length; never whole-length > 128."""
    if length <= 128:
        return length, length                 # single block, full-dim exception
    padded = -(-length // 128) * 128          # round up to multiple of 128
    for t in (preferred, 512, 256, 128):
        if t <= padded and padded % t == 0:
            return t, padded
    return 128, padded


def _vmem_limit_bytes(H, Dh, tq, tk, dim, csize, osize):
    hd = H * Dh
    b = 0
    b += 2 * H * tq * Dh * csize              # q tile (double-buffered)
    b += 2 * 2 * H * tk * Dh * csize          # k, v tiles
    b += 2 * tq * dim * osize                 # out tile
    b += 2 * (hd * dim * csize + dim * 4)     # wo, bo (constant index)
    b += 2 * 8 * max(tk, 128) * 4             # amask tile
    b += 2 * H * tq * 128 * 4                 # m, l scratch (lane-padded)
    b += H * tq * Dh * 4                      # acc scratch
    b += H * tq * tk * (4 + 4 + csize)        # s / p score temporaries + slack
    budget = int(b * 1.5) + (4 << 20)
    return max(32 << 20, min(60 << 20, budget))   # stay under v7x physical VMEM


def cross_attention_plus(query, key, value, params,
                         attention_mask=None, causal=False,
                         *, num_heads, head_dim,
                         block_q=512, block_k=256,
                         compute_dtype=jnp.bfloat16):
    """Pallas-backed CrossAttentionPlus forward (eval mode, supplied_attn=None).

    attention_mask: optional additive key-padding bias, shape (B, Lk),
                    (B, 1, Lk) or (B, 1, 1, Lk).  causal: standard causal mask.
    """
    B, Lq, dim = query.shape
    Lk = key.shape[1]
    H, Dh = num_heads, head_dim
    HDh = H * Dh
    out_dtype = query.dtype
    scale = float(head_dim) ** -0.5

    tq, Lq_pad = _tile_and_pad(Lq, block_q)
    tk, Lk_pad = _tile_and_pad(Lk, block_k)

    cdtype = compute_dtype
    # Fold 1/sqrt(head_dim) into Wq (free); all MXU operands in bf16.
    wq = (params["wq"] * scale).astype(cdtype)
    wk = params["wk"].astype(cdtype)
    wv = params["wv"].astype(cdtype)
    wo = params["wo"].astype(cdtype)
    bo = params["bo"].reshape(1, dim).astype(jnp.float32)

    qc = query.astype(cdtype)
    kc = key.astype(cdtype)
    vc = value.astype(cdtype)
    if Lq_pad != Lq:
        qc = jnp.pad(qc, ((0, 0), (0, Lq_pad - Lq), (0, 0)))
    if Lk_pad != Lk:
        kc = jnp.pad(kc, ((0, 0), (0, Lk_pad - Lk), (0, 0)))
        vc = jnp.pad(vc, ((0, 0), (0, Lk_pad - Lk), (0, 0)))

    # Hoisted Q/K/V projections: one plain XLA matmul each, head-major layout,
    # so the kernel never recomputes projections or relayouts per key step.
    def proj(x, w, L):
        return (x @ w).reshape(B, L, H, Dh).transpose(0, 2, 1, 3)
    qh = proj(qc, wq, Lq_pad)                 # (B, H, Lq_pad, Dh)
    kh = proj(kc, wk, Lk_pad)                 # (B, H, Lk_pad, Dh)
    vh = proj(vc, wv, Lk_pad)                 # (B, H, Lk_pad, Dh)

    apply_mask = (attention_mask is not None) or (Lk_pad != Lk)
    if attention_mask is not None:
        am = attention_mask.reshape(B, Lk).astype(jnp.float32)
    else:
        am = jnp.zeros((B, Lk), jnp.float32)
    if Lk_pad != Lk:
        am = jnp.pad(am, ((0, 0), (0, Lk_pad - Lk)), constant_values=-1e9)
    amask = am.reshape(B, 1, Lk_pad)

    # Causal: clamp the key-side block index so skipped above-diagonal tiles
    # repeat the previous block (pipeline elides the DMA -> ~50% less K/V HBM).
    def _last_kblk(qi):
        return (qi * tq + tq - 1) // tk
    if causal:
        kv_map = lambda b, qi, ki: (b, 0, jnp.minimum(ki, _last_kblk(qi)), 0)
        am_map = lambda b, qi, ki: (b, 0, jnp.minimum(ki, _last_kblk(qi)))
    else:
        kv_map = lambda b, qi, ki: (b, 0, ki, 0)
        am_map = lambda b, qi, ki: (b, 0, ki)

    kernel = functools.partial(_flash_kernel, causal=bool(causal),
                               apply_mask=apply_mask)

    grid = (B, Lq_pad // tq, Lk_pad // tk)
    grid_spec = pltpu.PrefetchScalarGridSpec(
        num_scalar_prefetch=0,
        grid=grid,
        in_specs=[
            pl.BlockSpec((1, H, tq, Dh), lambda b, qi, ki: (b, 0, qi, 0)),  # Q
            pl.BlockSpec((1, H, tk, Dh), kv_map),                           # K
            pl.BlockSpec((1, H, tk, Dh), kv_map),                           # V
            pl.BlockSpec((1, 1, tk), am_map),                               # mask
            pl.BlockSpec((HDh, dim), lambda b, qi, ki: (0, 0)),             # wo
            pl.BlockSpec((1, dim), lambda b, qi, ki: (0, 0)),               # bo
        ],
        out_specs=pl.BlockSpec((1, tq, dim), lambda b, qi, ki: (b, qi, 0)),
        scratch_shapes=[
            pltpu.VMEM((H, tq, 1), jnp.float32),     # running max
            pltpu.VMEM((H, tq, 1), jnp.float32),     # running sum
            pltpu.VMEM((H, tq, Dh), jnp.float32),    # accumulator
        ],
    )

    vmem_limit = _vmem_limit_bytes(H, Dh, tq, tk, dim,
                                   jnp.dtype(cdtype).itemsize,
                                   jnp.dtype(out_dtype).itemsize)

    out = pl.pallas_call(
        kernel,
        out_shape=jax.ShapeDtypeStruct((B, Lq_pad, dim), out_dtype),
        grid_spec=grid_spec,
        compiler_params=pltpu.CompilerParams(
            dimension_semantics=("parallel", "parallel", "arbitrary"),
            vmem_limit_bytes=vmem_limit),
    )(qh, kh, vh, amask, wo, bo)

    return out[:, :Lq] if Lq_pad != Lq else out


def _init_params(key, dim, num_heads, head_dim):
    hd = num_heads * head_dim
    k1, k2, k3, k4, k5 = jax.random.split(key, 5)
    lim_in = 1.0 / (dim ** 0.5)
    lim_out = 1.0 / (hd ** 0.5)
    # Stored as (in_dim, out_dim), i.e. transposed vs torch nn.Linear.weight.
    return {
        "wq": jax.random.uniform(k1, (dim, hd), jnp.float32, -lim_in, lim_in),
        "wk": jax.random.uniform(k2, (dim, hd), jnp.float32, -lim_in, lim_in),
        "wv": jax.random.uniform(k3, (dim, hd), jnp.float32, -lim_in, lim_in),
        "wo": jax.random.uniform(k4, (hd, dim), jnp.float32, -lim_out, lim_out),
        "bo": jax.random.uniform(k5, (dim,), jnp.float32, -lim_out, lim_out),
    }


def _reference(query, key, value, params, num_heads, head_dim,
               attention_mask=None, causal=False):
    """Plain-JAX f32 reference mirroring the PyTorch forward (eval mode)."""
    B, Lq, dim = query.shape
    Lk = key.shape[1]
    scale = float(head_dim) ** -0.5
    q = (query @ params["wq"]).reshape(B, Lq, num_heads, head_dim).transpose(0, 2, 1, 3)
    k = (key @ params["wk"]).reshape(B, Lk, num_heads, head_dim).transpose(0, 2, 1, 3)
    v = (value @ params["wv"]).reshape(B, Lk, num_heads, head_dim).transpose(0, 2, 1, 3)
    scores = jnp.einsum("bhqd,bhkd->bhqk", q, k) * scale
    if causal:
        cm = jnp.triu(jnp.ones((Lq, Lk), bool), k=1)
        scores = jnp.where(cm[None, None], -1e9, scores)
    if attention_mask is not None:
        scores = scores + attention_mask.reshape(B, 1, 1, Lk)
    attn = jax.nn.softmax(scores, axis=-1)
    out = jnp.einsum("bhqk,bhkd->bhqd", attn, v)
    out = out.transpose(0, 2, 1, 3).reshape(B, Lq, num_heads * head_dim)
    return out @ params["wo"] + params["bo"]


if __name__ == "__main__":
    B, Lq, Lk = 2, 8, 8
    dim, num_heads, head_dim = 32, 4, 8

    root = jax.random.PRNGKey(0)
    kp_, kq_, kk_, kv_, km_ = jax.random.split(root, 5)
    params = _init_params(kp_, dim, num_heads, head_dim)

    query = jax.random.normal(kq_, (B, Lq, dim), jnp.float32)
    key = jax.random.normal(kk_, (B, Lk, dim), jnp.float32)
    value = jax.random.normal(kv_, (B, Lk, dim), jnp.float32)

    # Path 1: no masks.
    out = cross_attention_plus(query, key, value, params,
                               num_heads=num_heads, head_dim=head_dim)
    out = jax.block_until_ready(out)
    ref = _reference(query, key, value, params, num_heads, head_dim)
    assert out.shape == (B, Lq, dim)
    # Tolerance covers bf16 MXU operands + pl.reciprocal(approx=True).
    assert jnp.allclose(out, ref, atol=3e-2, rtol=3e-2), "mismatch (no mask)"

    # Path 2: causal + additive key-padding mask.
    amask = jnp.where(jax.random.uniform(km_, (B, Lk)) < 0.25, -1e9, 0.0
                      ).astype(jnp.float32)
    out2 = cross_attention_plus(query, key, value, params,
                                attention_mask=amask, causal=True,
                                num_heads=num_heads, head_dim=head_dim)
    out2 = jax.block_until_ready(out2)
    ref2 = _reference(query, key, value, params, num_heads, head_dim,
                      attention_mask=amask, causal=True)
    assert jnp.allclose(out2, ref2, atol=3e-2, rtol=3e-2), "mismatch (masked)"

    print("KERNEL_OK")
</pallas_src>

<mosaic_0001>
module attributes {stable_mosaic.version = 11 : i64} {
  func.func @_flash_kernel(%arg0: i32, %arg1: i32, %arg2: i32, %arg3: memref<1x4x8x8xbf16, #tpu.memory_space<vmem>>, %arg4: memref<1x4x8x8xbf16, #tpu.memory_space<vmem>>, %arg5: memref<1x4x8x8xbf16, #tpu.memory_space<vmem>>, %arg6: memref<1x1x8xf32, #tpu.memory_space<vmem>>, %arg7: memref<32x32xbf16, #tpu.memory_space<vmem>>, %arg8: memref<1x32xf32, #tpu.memory_space<vmem>>, %arg9: memref<1x8x32xf32, #tpu.memory_space<vmem>>, %arg10: memref<4x8x1xf32, #tpu.memory_space<vmem>>, %arg11: memref<4x8x1xf32, #tpu.memory_space<vmem>>, %arg12: memref<4x8x8xf32, #tpu.memory_space<vmem>>) attributes {dimension_semantics = [#tpu.dimension_semantics<parallel>, #tpu.dimension_semantics<parallel>, #tpu.dimension_semantics<arbitrary>], iteration_bounds = array<i64: 2, 1, 1>, scalar_prefetch = 0 : i64, scratch_operands = 3 : i64, tpu.core_type = #tpu.core_type<tc>, window_params = [{transform_indices = @transform_0, window_bounds = array<i64: 1, 4, 8, 8>}, {transform_indices = @transform_1, window_bounds = array<i64: 1, 4, 8, 8>}, {transform_indices = @transform_2, window_bounds = array<i64: 1, 4, 8, 8>}, {transform_indices = @transform_3, window_bounds = array<i64: 1, 1, 8>}, {pipeline_mode = #tpu.pipeline_mode<synchronous>, transform_indices = @transform_4, window_bounds = array<i64: 32, 32>}, {pipeline_mode = #tpu.pipeline_mode<synchronous>, transform_indices = @transform_5, window_bounds = array<i64: 1, 32>}, {transform_indices = @transform_6, window_bounds = array<i64: 1, 8, 32>}]} {
    %c0_i32 = arith.constant 0 : i32
    %0 = arith.cmpi eq, %arg2, %c0_i32 : i32
    %1 = arith.extui %0 : i1 to i32
    %c0_i32_0 = arith.constant 0 : i32
    %2 = arith.cmpi ne, %1, %c0_i32_0 : i32
    scf.if %2 {
      %cst_35 = arith.constant 0xFF800000 : f32
      %36 = vector.broadcast %cst_35 : f32 to vector<4x8x1xf32>
      %c0_36 = arith.constant 0 : index
      %c0_37 = arith.constant 0 : index
      %c0_38 = arith.constant 0 : index
      %37 = vector.load %arg10[%c0_36, %c0_37, %c0_38] : memref<4x8x1xf32, #tpu.memory_space<vmem>>, vector<4x8x1xf32>
      tpu.vector_store %arg10[%c0_36, %c0_37, %c0_38], %36 {strides = array<i32>} : memref<4x8x1xf32, #tpu.memory_space<vmem>>, vector<4x8x1xf32>,
      %cst_39 = arith.constant 0.000000e+00 : f32
      %38 = vector.broadcast %cst_39 : f32 to vector<4x8x1xf32>
      %c0_40 = arith.constant 0 : index
      %c0_41 = arith.constant 0 : index
      %c0_42 = arith.constant 0 : index
      %39 = vector.load %arg11[%c0_40, %c0_41, %c0_42] : memref<4x8x1xf32, #tpu.memory_space<vmem>>, vector<4x8x1xf32>
      tpu.vector_store %arg11[%c0_40, %c0_41, %c0_42], %38 {strides = array<i32>} : memref<4x8x1xf32, #tpu.memory_space<vmem>>, vector<4x8x1xf32>,
      %cst_43 = arith.constant 0.000000e+00 : f32
      %40 = vector.broadcast %cst_43 : f32 to vector<4x8x8xf32>
      %c0_44 = arith.constant 0 : index
      %c0_45 = arith.constant 0 : index
      %c0_46 = arith.constant 0 : index
      %41 = vector.load %arg12[%c0_44, %c0_45, %c0_46] : memref<4x8x8xf32, #tpu.memory_space<vmem>>, vector<4x8x8xf32>
      tpu.vector_store %arg12[%c0_44, %c0_45, %c0_46], %40 {strides = array<i32>} : memref<4x8x8xf32, #tpu.memory_space<vmem>>, vector<4x8x8xf32>,
    } else {
    }
    %c0 = arith.constant 0 : index
    %c0_1 = arith.constant 0 : index
    %c0_2 = arith.constant 0 : index
    %c0_3 = arith.constant 0 : index
    %3 = vector.load %arg3[%c0, %c0_1, %c0_2, %c0_3] : memref<1x4x8x8xbf16, #tpu.memory_space<vmem>>, vector<1x4x8x8xbf16>
    %4 = vector.shape_cast %3 : vector<1x4x8x8xbf16> to vector<4x8x8xbf16>
    %c0_4 = arith.constant 0 : index
    %c0_5 = arith.constant 0 : index
    %c0_6 = arith.constant 0 : index
    %c0_7 = arith.constant 0 : index
    %5 = vector.load %arg4[%c0_4, %c0_5, %c0_6, %c0_7] : memref<1x4x8x8xbf16, #tpu.memory_space<vmem>>, vector<1x4x8x8xbf16>
    %6 = vector.shape_cast %5 : vector<1x4x8x8xbf16> to vector<4x8x8xbf16>
    %c0_8 = arith.constant 0 : index
    %c0_9 = arith.constant 0 : index
    %c0_10 = arith.constant 0 : index
    %c0_11 = arith.constant 0 : index
    %7 = vector.load %arg5[%c0_8, %c0_9, %c0_10, %c0_11] : memref<1x4x8x8xbf16, #tpu.memory_space<vmem>>, vector<1x4x8x8xbf16>
    %8 = vector.shape_cast %7 : vector<1x4x8x8xbf16> to vector<4x8x8xbf16>
    "tpu.trace_start"() <{level = 10 : i32, message = "hqd,hkd->hqk"}> : () -> ()
    %cst = arith.constant dense<0.000000e+00> : vector<4x8x8xf32>
    %9 = tpu.matmul %4, %6, %cst {dimension_numbers = #tpu.dot_dimension_numbers<[2], [2], [1], [1], [0, 0, 0, 1, 1, 1], [0], [0]>} : vector<4x8x8xbf16>, vector<4x8x8xbf16>, vector<4x8x8xf32> -> vector<4x8x8xf32>
    "tpu.trace_stop"() : () -> ()
    %c0_12 = arith.constant 0 : index
    %c0_13 = arith.constant 0 : index
    %c0_14 = arith.constant 0 : index
    %10 = vector.load %arg10[%c0_12, %c0_13, %c0_14] : memref<4x8x1xf32, #tpu.memory_space<vmem>>, vector<4x8x1xf32>
    %cst_15 = arith.constant dense<0xFF800000> : vector<4x8xf32>
    %11 = vector.multi_reduction <maximumf>, %9, %cst_15 [2] : vector<4x8x8xf32> to vector<4x8xf32>
    %12 = vector.shape_cast %11 : vector<4x8xf32> to vector<4x8x1xf32>
    %13 = arith.maximumf %10, %12 : vector<4x8x1xf32>
    %14 = arith.subf %10, %13 : vector<4x8x1xf32>
    %15 = math.exp %14 : vector<4x8x1xf32>
    %16 = vector.broadcast %13 : vector<4x8x1xf32> to vector<4x8x8xf32>
    %17 = arith.subf %9, %16 : vector<4x8x8xf32>
    %18 = math.exp %17 : vector<4x8x8xf32>
    %c0_16 = arith.constant 0 : index
    %c0_17 = arith.constant 0 : index
    %c0_18 = arith.constant 0 : index
    %19 = vector.load %arg11[%c0_16, %c0_17, %c0_18] : memref<4x8x1xf32, #tpu.memory_space<vmem>>, vector<4x8x1xf32>
    %20 = arith.mulf %15, %19 : vector<4x8x1xf32>
    %cst_19 = arith.constant dense<0.000000e+00> : vector<4x8xf32>
    %21 = vector.multi_reduction <add>, %18, %cst_19 [2] : vector<4x8x8xf32> to vector<4x8xf32>
    %22 = vector.shape_cast %21 : vector<4x8xf32> to vector<4x8x1xf32>
    %23 = arith.addf %20, %22 : vector<4x8x1xf32>
    %c0_20 = arith.constant 0 : index
    %c0_21 = arith.constant 0 : index
    %c0_22 = arith.constant 0 : index
    %24 = vector.load %arg11[%c0_20, %c0_21, %c0_22] : memref<4x8x1xf32, #tpu.memory_space<vmem>>, vector<4x8x1xf32>
    tpu.vector_store %arg11[%c0_20, %c0_21, %c0_22], %23 {strides = array<i32>} : memref<4x8x1xf32, #tpu.memory_space<vmem>>, vector<4x8x1xf32>,
    %c0_23 = arith.constant 0 : index
    %c0_24 = arith.constant 0 : index
    %c0_25 = arith.constant 0 : index
    %25 = vector.load %arg12[%c0_23, %c0_24, %c0_25] : memref<4x8x8xf32, #tpu.memory_space<vmem>>, vector<4x8x8xf32>
    %26 = vector.broadcast %15 : vector<4x8x1xf32> to vector<4x8x8xf32>
    %27 = arith.mulf %26, %25 : vector<4x8x8xf32>
    %28 = arith.truncf %18 : vector<4x8x8xf32> to vector<4x8x8xbf16>
    "tpu.trace_start"() <{level = 10 : i32, message = "hqk,hkd->hqd"}> : () -> ()
    %cst_26 = arith.constant dense<0.000000e+00> : vector<4x8x8xf32>
    %29 = tpu.matmul %28, %8, %cst_26 {dimension_numbers = #tpu.dot_dimension_numbers<[2], [1], [1], [2], [0, 0, 0, 1, 1, 2], [0], [0]>} : vector<4x8x8xbf16>, vector<4x8x8xbf16>, vector<4x8x8xf32> -> vector<4x8x8xf32>
    "tpu.trace_stop"() : () -> ()
    %30 = arith.addf %27, %29 : vector<4x8x8xf32>
    %c0_27 = arith.constant 0 : index
    %c0_28 = arith.constant 0 : index
    %c0_29 = arith.constant 0 : index
    %31 = vector.load %arg12[%c0_27, %c0_28, %c0_29] : memref<4x8x8xf32, #tpu.memory_space<vmem>>, vector<4x8x8xf32>
    tpu.vector_store %arg12[%c0_27, %c0_28, %c0_29], %30 {strides = array<i32>} : memref<4x8x8xf32, #tpu.memory_space<vmem>>, vector<4x8x8xf32>,
    %c0_30 = arith.constant 0 : index
    %c0_31 = arith.constant 0 : index
    %c0_32 = arith.constant 0 : index
    %32 = vector.load %arg10[%c0_30, %c0_31, %c0_32] : memref<4x8x1xf32, #tpu.memory_space<vmem>>, vector<4x8x1xf32>
    tpu.vector_store %arg10[%c0_30, %c0_31, %c0_32], %13 {strides = array<i32>} : memref<4x8x1xf32, #tpu.memory_space<vmem>>, vector<4x8x1xf32>,
    %c0_i32_33 = arith.constant 0 : i32
    %33 = arith.cmpi eq, %arg2, %c0_i32_33 : i32
    %34 = arith.extui %33 : i1 to i32
    %c0_i32_34 = arith.constant 0 : i32
    %35 = arith.cmpi ne, %34, %c0_i32_34 : i32
    scf.if %35 {
      %c0_35 = arith.constant 0 : index
      %c0_36 = arith.constant 0 : index
      %c0_37 = arith.constant 0 : index
      %36 = vector.load %arg11[%c0_35, %c0_36, %c0_37] : memref<4x8x1xf32, #tpu.memory_space<vmem>>, vector<4x8x1xf32>
      %37 = tpu.reciprocal %36 {approx = true} : vector<4x8x1xf32> -> vector<4x8x1xf32>
      %c0_38 = arith.constant 0 : index
      %c0_39 = arith.constant 0 : index
      %c0_40 = arith.constant 0 : index
      %38 = vector.load %arg12[%c0_38, %c0_39, %c0_40] : memref<4x8x8xf32, #tpu.memory_space<vmem>>, vector<4x8x8xf32>
      %39 = vector.broadcast %37 : vector<4x8x1xf32> to vector<4x8x8xf32>
      %40 = arith.mulf %38, %39 : vector<4x8x8xf32>
      %41 = tpu.transpose %40, [1, 0, 2] : vector<4x8x8xf32> -> vector<8x4x8xf32>
      %42 = vector.shape_cast %41 : vector<8x4x8xf32> to vector<8x32xf32>
      %43 = arith.truncf %42 : vector<8x32xf32> to vector<8x32xbf16>
      %c0_41 = arith.constant 0 : index
      %c0_42 = arith.constant 0 : index
      %44 = vector.load %arg7[%c0_41, %c0_42] : memref<32x32xbf16, #tpu.memory_space<vmem>>, vector<32x32xbf16>
      %cst_43 = arith.constant dense<0.000000e+00> : vector<8x32xf32>
      %45 = tpu.matmul %43, %44, %cst_43 {dimension_numbers = #tpu.dot_dimension_numbers<[1], [0], [0], [1], [0, 0, 1, 1], [], []>} : vector<8x32xbf16>, vector<32x32xbf16>, vector<8x32xf32> -> vector<8x32xf32>
      %c0_44 = arith.constant 0 : index
      %c0_45 = arith.constant 0 : index
      %46 = vector.load %arg8[%c0_44, %c0_45] : memref<1x32xf32, #tpu.memory_space<vmem>>, vector<1x32xf32>
      %47 = vector.broadcast %46 : vector<1x32xf32> to vector<8x32xf32>
      %48 = arith.addf %45, %47 : vector<8x32xf32>
      %c0_46 = arith.constant 0 : index
      %c0_47 = arith.constant 0 : index
      %c0_48 = arith.constant 0 : index
      %49 = vector.load %arg9[%c0_46, %c0_47, %c0_48] : memref<1x8x32xf32, #tpu.memory_space<vmem>>, vector<1x8x32xf32>
      %50 = vector.shape_cast %49 : vector<1x8x32xf32> to vector<8x32xf32>
      %51 = vector.shape_cast %48 : vector<8x32xf32> to vector<1x8x32xf32>
      tpu.vector_store %arg9[%c0_46, %c0_47, %c0_48], %51 {strides = array<i32>} : memref<1x8x32xf32, #tpu.memory_space<vmem>>, vector<1x8x32xf32>,
    } else {
    }
    return
  }
  func.func @transform_0(%arg0: i32, %arg1: i32, %arg2: i32) -> (i32, i32, i32, i32) {
    %c0_i32 = arith.constant 0 : i32
    %c0_i32_0 = arith.constant 0 : i32
    %c0_i32_1 = arith.constant 0 : i32
    return %arg0, %c0_i32, %arg1, %c0_i32_0 : i32, i32, i32, i32
  }
  func.func @transform_1(%arg0: i32, %arg1: i32, %arg2: i32) -> (i32, i32, i32, i32) {
    %c0_i32 = arith.constant 0 : i32
    %c0_i32_0 = arith.constant 0 : i32
    %c0_i32_1 = arith.constant 0 : i32
    return %arg0, %c0_i32, %arg2, %c0_i32_0 : i32, i32, i32, i32
  }
  func.func @transform_2(%arg0: i32, %arg1: i32, %arg2: i32) -> (i32, i32, i32, i32) {
    %c0_i32 = arith.constant 0 : i32
    %c0_i32_0 = arith.constant 0 : i32
    %c0_i32_1 = arith.constant 0 : i32
    return %arg0, %c0_i32, %arg2, %c0_i32_0 : i32, i32, i32, i32
  }
  func.func @transform_3(%arg0: i32, %arg1: i32, %arg2: i32) -> (i32, i32, i32) {
    %c0_i32 = arith.constant 0 : i32
    %c0_i32_0 = arith.constant 0 : i32
    return %arg0, %c0_i32, %arg2 : i32, i32, i32
  }
  func.func @transform_4(%arg0: i32, %arg1: i32, %arg2: i32) -> (i32, i32) {
    %c0_i32 = arith.constant 0 : i32
    %c0_i32_0 = arith.constant 0 : i32
    %c0_i32_1 = arith.constant 0 : i32
    return %c0_i32, %c0_i32_0 : i32, i32
  }
  func.func @transform_5(%arg0: i32, %arg1: i32, %arg2: i32) -> (i32, i32) {
    %c0_i32 = arith.constant 0 : i32
    %c0_i32_0 = arith.constant 0 : i32
    %c0_i32_1 = arith.constant 0 : i32
    return %c0_i32, %c0_i32_0 : i32, i32
  }
  func.func @transform_6(%arg0: i32, %arg1: i32, %arg2: i32) -> (i32, i32, i32) {
    %c0_i32 = arith.constant 0 : i32
    %c0_i32_0 = arith.constant 0 : i32
    return %arg0, %arg1, %c0_i32 : i32, i32, i32
  }
}

</mosaic_0001>

<bundles_post_ra>
// kernel: tpu_custom_call.1
= control target key start
LH: loop header
LB: loop body
LE: loop exit
PB: predicated region body
PF: predicated region fallthrough
CT: control target
= control target key end

     0   :  { %s2352_s0 = inlined_call_operand.hbm [shape: bf16[2,4,8,8], index: 0, kind: input, shape index: {}]   ;;  %s2353_s1 = inlined_call_operand.hbm [shape: bf16[2,4,8,8], index: 1, kind: input, shape index: {}]   ;;  %s2354_s2 = inlined_call_operand.hbm [shape: bf16[2,4,8,8], index: 2, kind: input, shape index: {}]   ;;  %s2355_s3 = inlined_call_operand.vmem [shape: f32[2,1,8], index: 3, kind: input, shape index: {}]   ;;  %s2356_s4 = inlined_call_operand.hbm [shape: bf16[32,32], index: 4, kind: input, shape index: {}]   ;;  %s2357_s5 = inlined_call_operand.vmem [shape: f32[1,32], index: 5, kind: input, shape index: {}]   ;;  %s2358_s6 = inlined_call_operand.hbm [shape: f32[2,8,32], index: 6, kind: output, shape index: {}]  }
   0x1   :  { %2378 = sst [smem:[#allocation23_spill]] %s2352_s0 }
   0x2   :  { %2379 = sst [smem:[#allocation24_spill]] %s2353_s1 }
   0x3   :  { %11 = vsyncpa [#allocation6], 0 }
   0x4   :  { %13 = vsyncpa [#allocation6 + $0x1], 0 }
   0x5   :  { %14 = vsyncpa [#allocation9], 0 }
   0x6   :  { %16 = vsyncpa [#allocation9 + $0x1], 0 }
   0x7   :  { %17 = vsyncpa [#allocation12], 0 }
   0x8   :  { %18 = vsyncpa [#allocation7], 0 }
   0x9   :  { %20 = vsyncpa [#allocation7 + $0x1], 0  ;;  %s1883_s21 = smov 0   ;;  %s1885_s22 = smov 0  }
   0xa   :  { %s1887_s3 = smov 0   ;;  %s1889_s23 = smov 0  }
   0xb   :  { %s1891_s24 = smov 0   ;;  %s1893_s25 = smov 0  }
   0xc LB: > { %2380 = sst [smem:[#allocation18_spill]] %s1818_s3  ;;  %s45_s26 = sadd.s32 1, %s1826_s24  ;;  %s1830_s25 = sphi %s1893_s25, %s26_s25   ;;  %s1826_s24 = sphi %s1891_s24, %s2412_s24   ;;  %s1822_s23 = sphi %s1889_s23, %s2411_s23   ;;  %s1818_s3 = sphi %s1887_s3, %s2410_s3   ;;  %s1814_s22 = sphi %s1885_s22, %s2414_s22   ;;  %s1810_s21 = sphi %s1883_s21, %s2413_s21  }
   0xd   : > { %2381 = sst [smem:[#allocation19_spill]] %s1826_s24  ;;  %s54_s27 = sadd.s32 1, %s1818_s3 }
   0xe   : > { %2382 = sst [smem:[#allocation20_spill]] %s1830_s25  ;;  %p47_p0 = scmp.ge.s32.totalorder %s45_s26, 2 }
   0xf   : > { %p2359_p1 = scmp.ne.s32.totalorder %s1818_s3, %s1814_s22  ;;  %p62_p2 = scmp.eq.s32.totalorder %s1830_s25, 0 }
  0x10   : > { %s2416_s26 = smov (%p47_p0, %s45_s26), 0  ;;  %p1531_p6 = scmp.lt.s32.totalorder %s1830_s25, 2 }
  0x11   : > { %2383 = sst [smem:[#allocation21_spill]] %s2416_s26  ;;  %p63_p3 = por %p62_p2, %p2359_p1 }
  0x12   : > { %s49_s28 = ssub.s32 %s1826_s24, %s2416_s26  ;;  %s2364_s29 = sand.u32 1, %s1818_s3  }
  0x13   : > { %p52_p5 = scmp.eq.s32.totalorder %s49_s28, 0  ;;  %s1929_s30 = sshll.u32 %s1826_s24, 8 }
  0x14   : > { %s1936_s8 = sshll.u32 %s2364_s29, 4  ;;  %p1938_p7 = pnand %p1531_p6, %p63_p3 }
  0x15   : > { %s1932_s7 = scalar_select %p52_p5, %s1818_s3, %s54_s27  }
  0x16   : > { %s2385_s9 = scalar_select %p1938_p7, 1, 0 }
  0x17   : > { %2384 = sst [smem:[#allocation22_spill]] %s1932_s7  ;;  %s283_s10 = sand.u32 1, %s1830_s25  }
  0x18   : > { %s2386_s1 = sld [smem:[#allocation24_spill]]  ;;  %s287_s14 = scalar_lea.vmem [#allocation8], %s1936_s8 }
  0x19   : > { %s295_s15 = sshll.u32 %s287_s14, 4  ;;  %s1952_s16 = scalar_lea.sflag [#allocation9], %s283_s10  ;;  %s1950_s15 = int_to_ptr.vmem [resolvable:$true] %s295_s15 }
  0x1a   : > { %p1958_p9 = pneg %p1938_p7 }
  0x1c   : > { %s2387_s18 = scalar_select %p1958_p9, 1, 0 }
  0x1e   : > { %s1947_s13 = scalar_lea.hbm %s2386_s1, %s1929_s30  ;;  %s1627_s27 = scalar_lea.hbm %s2386_s1, 512 }
  0x1f   : > { %s1622_s17 = scalar_lea.hbm %s1947_s13, 256  ;;  %p1628_p12 = scmp.lt.u32.totalorder %s1947_s13, %s2386_s1 }
  0x20   : > { %p1623_p8 = scmp.ne.s32.totalorder %s1947_s13, %s1622_s17  ;;  %p1629_p13 = scmp.lt.u32.totalorder %s1627_s27, %s1622_s17 }
  0x21   : > { %p1631_p2 = scmp.lt.u32.totalorder %s1622_s17, %s1947_s13 }
  0x22   : > { %p1625_p10 = pnand %p1958_p9, %p1623_p8  ;;  %p1630_p0 = por %p1629_p13, %p1628_p12 }
  0x24   : > { %p1626_p11 = pneg %p1625_p10  ;;  %p1632_p3 = por %p1631_p2, %p1630_p0 }
  0x26   : > { %p1633_p5 = pnand %p1632_p3, %p1626_p11 }
  0x28   : > { %1636 = shalt.err (!%p1633_p5)
}
  0x29   : > { %s1637_s10 = scalar_lea.vmem %s1950_s15, 256  ;;  %s1832_s12 = smov [#allocation8]  }
  0x2a   : > { %p1638_p6 = scmp.ne.s32.totalorder %s1950_s15, %s1637_s10  ;;  %s1642_s14 = sshll.u32 %s1832_s12, 4  ;;  %s1643_s14 = int_to_ptr.vmem [resolvable:$false] %s1642_s14 }
  0x2b   : > { %s1644_s19 = scalar_lea.vmem %s1643_s14, 512  ;;  %p1645_p4 = scmp.lt.s32.totalorder %s1950_s15, %s1643_s14 }
  0x2c   : > { %p1640_p8 = pnand %p1638_p6, %p1958_p9  ;;  %p1646_p1 = scmp.lt.s32.totalorder %s1644_s19, %s1637_s10 }
  0x2e   : > { %p1641_p10 = pneg %p1640_p8  ;;  %p1647_p12 = por %p1646_p1, %p1645_p4 }
  0x30   : > { %p1648_p13 = pnand %p1647_p12, %p1641_p10 }
  0x32   : > { %1651 = shalt.err (!%p1648_p13)
}
  0x33   : > { %s2360_s17 = smov 64   ;;  %s2362_s20 = smov 4  }
  0x34   : > { %1522 = dma.hbm_to_vmem [thread:$0]  (!%p1938_p7), %s1947_s13, 256, %s1950_s15, %s1952_s16, %s2360_s17, %s2360_s17, %s2362_s20  }
  0x35   : > { %s1986_s27 = sadd.s32 4294967295, %s1830_s25   ;;  %s1385_s28 = sadd.s32 4294967294, %s1830_s25  }
  0x36   : > { %p67_p1 = scmp.ne.s32.totalorder %s1814_s22, %s1810_s21  ;;  %p2369_p4 = scmp.eq.s32.totalorder %s1986_s27, 0 }
  0x37   : > { %p219_p11 = scmp.eq.s32.totalorder %s1986_s27, 1  ;;  %p225_p0 = scmp.eq.s32.totalorder %s1385_s28, 1 }
  0x38   : > { %p1386_p2 = scmp.ge.s32.totalorder %s1830_s25, 1  ;;  %p1996_p3 = por %p2369_p4, %p67_p1 }
  0x39   : > { %p2389_p5 = scmp.ne.s32.totalorder %s1818_s3, %s1814_s22  ;;  %p2007_p8 = por %p225_p0, %p67_p1 }
  0x3a   : > { %s2388_s11 = scalar_select %p1996_p3, 1, 0 }
  0x3b   : > { %p2003_p6 = por %p219_p11, %p2389_p5  ;;  %p232_p10 = scmp.lt.s32.totalorder %s1830_s25, 3 }
  0x3c   : > { %s2391_s15 = scalar_select %p2007_p8, 1, 0 }
  0x3d   : > { %s2390_s13 = scalar_select %p2003_p6, 1, 0 }
  0x3e   : > { %p2012_p12 = pnand %p1386_p2, %p232_p10  ;;  %s1835_s12 = smov [#allocation11]  }
  0x3f   : > { %s244_s14 = sshll.u32 %s1835_s12, 4  ;;  %s2393_s0 = sld [smem:[#allocation23_spill]]  ;;  %s2016_s14 = int_to_ptr.vmem [resolvable:$true] %s244_s14 }
  0x40   : > { %s2392_s10 = scalar_select %p2012_p12, 1, 0 }
  0x41   : > { %p1512_p13 = pneg %p2012_p12  ;;  %s265_s20 = scalar_lea.vmem [#allocation5], %s1936_s8 }
  0x42   : > { %s273_s29 = sshll.u32 %s265_s20, 4  ;;  %s2395_s12 = sand.u32 1, %s1818_s3   ;;  %s2033_s29 = int_to_ptr.vmem [resolvable:$true] %s273_s29 }
  0x43   : > { %p2029_p1 = pnand %p1512_p13, %p2369_p4  ;;  %s2037_s26 = scalar_lea.sflag [#allocation6], %s2395_s12 }
  0x45   : > { %s2024_s17 = scalar_lea.hbm %s2393_s0, %s1929_s30  ;;  %s1657_s7 = scalar_lea.hbm %s2393_s0, 512 }
  0x46   : > { %s2394_s1 = scalar_select %p2029_p1, 1, 0 }
  0x47   : > { %s1652_s24 = scalar_lea.hbm %s2024_s17, 256  ;;  %p1658_p5 = scmp.lt.u32.totalorder %s2024_s17, %s2393_s0 }
  0x48   : > { %p1653_p11 = scmp.ne.s32.totalorder %s2024_s17, %s1652_s24  ;;  %p1659_p10 = scmp.lt.u32.totalorder %s1657_s7, %s1652_s24 }
  0x49   : > { %p1661_p4 = scmp.lt.u32.totalorder %s1652_s24, %s2024_s17 }
  0x4a   : > { %p1655_p0 = pnand %p1653_p11, %p1958_p9  ;;  %p1660_p13 = por %p1659_p10, %p1658_p5 }
  0x4c   : > { %p1656_p2 = pneg %p1655_p0  ;;  %p1662_p8 = por %p1661_p4, %p1660_p13 }
  0x4e   : > { %p1663_p6 = pnand %p1662_p8, %p1656_p2 }
  0x50   : > { %1666 = shalt.err (!%p1663_p6)
}
  0x51   : > { %s1667_s12 = scalar_lea.vmem %s2033_s29, 256  ;;  %s1836_s19 = smov [#allocation5]  }
  0x52   : > { %p1668_p11 = scmp.ne.s32.totalorder %s2033_s29, %s1667_s12  ;;  %s1672_s28 = sshll.u32 %s1836_s19, 4  ;;  %s1673_s28 = int_to_ptr.vmem [resolvable:$false] %s1672_s28 }
  0x53   : > { %s1674_s25 = scalar_lea.vmem %s1673_s28, 512  ;;  %p1675_p12 = scmp.lt.s32.totalorder %s2033_s29, %s1673_s28 }
  0x54   : > { %p1670_p0 = pnand %p1668_p11, %p1958_p9  ;;  %p1676_p1 = scmp.lt.s32.totalorder %s1674_s25, %s1667_s12 }
  0x56   : > { %p1671_p3 = pneg %p1670_p0  ;;  %p1677_p5 = por %p1676_p1, %p1675_p12 }
  0x58   : > { %p1678_p10 = pnand %p1677_p5, %p1671_p3 }
  0x5a   : > { %1681 = shalt.err (!%p1678_p10)
}
  0x5b   : > { %s2396_s24 = smov 4   ;;  %s2397_s7 = smov 64  }
  0x5c   : > { %1519 = dma.hbm_to_vmem [thread:$0]  (!%p1938_p7), %s2024_s17, 256, %s2033_s29, %s2037_s26, %s2397_s7, %s2397_s7, %s2396_s24  }
  0x5d   : > { %s1682_s19 = scalar_lea.hbm %s2356_s4, 256  ;;  %p2398_p3 = scmp.ne.s32.totalorder %s2394_s1, 0 }
  0x5e   : > { %p1683_p4 = scmp.ne.s32.totalorder %s2356_s4, %s1682_s19  ;;  %p1689_p1 = scmp.lt.u32.totalorder %s1682_s19, %s2356_s4 }
  0x5f   : > { %p1684_p6 = pneg %p2398_p3 }
  0x61   : > { %p1685_p8 = pnand %p1684_p6, %p1683_p4 }
  0x63   : > { %p1686_p12 = pneg %p1685_p8 }
  0x65   : > { %p1691_p2 = pnand %p1689_p1, %p1686_p12 }
  0x67   : > { %1694 = shalt.err (!%p1691_p2)
}
  0x68   : > { %s1695_s26 = scalar_lea.vmem %s2016_s14, 256  ;;  %p1703_p5 = scmp.lt.s32.totalorder %s2016_s14, %s2016_s14 }
  0x69   : > { %p1696_p13 = scmp.ne.s32.totalorder %s2016_s14, %s1695_s26  ;;  %p1704_p10 = scmp.lt.s32.totalorder %s1695_s26, %s1695_s26 }
  0x6b   : > { %p1698_p11 = pnand %p1696_p13, %p1684_p6  ;;  %p1705_p7 = por %p1704_p10, %p1703_p5 }
  0x6d   : > { %p1699_p0 = pneg %p1698_p11 }
  0x6f   : > { %p1706_p9 = pnand %p1705_p7, %p1699_p0 }
  0x71   : > { %1709 = shalt.err (!%p1706_p9)
}
  0x72   : > { %1515 = dma.hbm_to_vmem [thread:$0]  (!%p2398_p3), %s2356_s4, 256, %s2016_s14, [#allocation12], %s2397_s7, %s2397_s7, %s2396_s24  }
  0x73   : > { %s2092_s20 = scalar_lea.hbm %s2354_s2, %s1929_s30  ;;  %s309_s1 = scalar_lea.vmem [#allocation10], %s1936_s8 }
  0x74   : > { %s317_s19 = sshll.u32 %s309_s1, 4  ;;  %s1710_s28 = scalar_lea.hbm %s2092_s20, 256  ;;  %s2095_s19 = int_to_ptr.vmem [resolvable:$true] %s317_s19 }
  0x75   : > { %p1711_p7 = scmp.ne.s32.totalorder %s2092_s20, %s1710_s28  ;;  %p2399_p9 = scmp.ne.s32.totalorder %s2387_s18, 0 }
  0x76   : > { %s1715_s25 = scalar_lea.hbm %s2354_s2, 512  ;;  %p1716_p3 = scmp.lt.u32.totalorder %s2092_s20, %s2354_s2 }
  0x77   : > { %p1713_p4 = pnand %p1711_p7, %p2399_p9  ;;  %p1717_p8 = scmp.lt.u32.totalorder %s1715_s25, %s1710_s28 }
  0x78   : > { %p1719_p1 = scmp.lt.u32.totalorder %s1710_s28, %s2092_s20 }
  0x79   : > { %p1714_p6 = pneg %p1713_p4  ;;  %p1718_p12 = por %p1717_p8, %p1716_p3 }
  0x7b   : > { %p1720_p2 = por %p1719_p1, %p1718_p12 }
  0x7d   : > { %p1721_p13 = pnand %p1720_p2, %p1714_p6 }
  0x7f   : > { %1724 = shalt.err (!%p1721_p13)
}
  0x80   : > { %s1725_s8 = scalar_lea.vmem %s2095_s19, 256  ;;  %s1837_s0 = smov [#allocation10]  }
  0x81   : > { %p1726_p11 = scmp.ne.s32.totalorder %s2095_s19, %s1725_s8  ;;  %s1730_s3 = sshll.u32 %s1837_s0, 4  ;;  %s1731_s3 = int_to_ptr.vmem [resolvable:$false] %s1730_s3 }
  0x82   : > { %s1732_s29 = scalar_lea.vmem %s1731_s3, 512  ;;  %p1733_p10 = scmp.lt.s32.totalorder %s2095_s19, %s1731_s3 }
  0x83   : > { %p1728_p0 = pnand %p1726_p11, %p2399_p9  ;;  %p1734_p7 = scmp.lt.s32.totalorder %s1732_s29, %s1725_s8 }
  0x85   : > { %p1729_p5 = pneg %p1728_p0  ;;  %p1735_p4 = por %p1734_p7, %p1733_p10 }
  0x87   : > { %p1736_p3 = pnand %p1735_p4, %p1729_p5 }
  0x89   : > { %1739 = shalt.err (!%p1736_p3)
}
  0x8a   : > { %p2400_p6 = scmp.ne.s32.totalorder %s2385_s9, 0  ;;  %p2401_p9 = scmp.ne.s32.totalorder %s2392_s10, 0 }
  0x8b   : > { %s2125_s18 = sand.u32 (!%p2401_p9), 1, %s1814_s22   ;;  %p2402_p8 = scmp.ne.s32.totalorder (!%p2401_p9), %s2388_s11, 0 }
  0x8c   : > { %1525 = dma.hbm_to_vmem [thread:$0]  (!%p2400_p6), %s2092_s20, 256, %s2095_s19, %s1952_s16, %s2397_s7, %s2397_s7, %s2396_s24  }
  0x8d   : > { %338 = sbr.rel (%p2401_p9) target bundleno = 1339 (0x53b), region = 44  ;;  %s1399_s17 = sshll.u32 (!%p2401_p9), %s2125_s18, 4 }
  0x8e   : > { %s341_s1 = scalar_lea.sflag (!%p2401_p9), [#allocation6], %s2125_s18  ;;  %s2129_s28 = scalar_lea.vmem (!%p2401_p9), [#allocation5], %s1399_s17 }
  0x94   : > { %1793 = dma.done.wait (%p2402_p8), %s341_s1, 256  }
  0x95   : > { %1795 = vsyncadd (%p2402_p8), %s341_s1, 4294967040  ;;  %s349_s9 = sand.u32 1, %s1986_s27   ;;  %s353_s10 = scalar_lea.vmem [#allocation8], %s1399_s17 }
  0x96   : > { %s350_s16 = scalar_lea.sflag [#allocation9], %s349_s9 }
  0x97   : > { %1797 = dma.done.wait (%p2402_p8), %s350_s16, 512  }
  0x98   : > { %1799 = vsyncadd (%p2402_p8), %s350_s16, 4294966784  ;;  %s2140_s24 = scalar_lea.vmem [#allocation10], %s1399_s17  ;;  %p2403_p12 = scmp.eq.s32.totalorder %s1986_s27, 0 }
  0x9a   : > { %1801 = dma.done.wait (%p2403_p12), [#allocation12], 256   ;;  %p2404_p1 = pmov %p2403_p12 }
  0x9b   : > { %vm431_vm0 = vcmask 64512   ;;  %v1838_v0 = vmov 0.0   ;;  %vm1839_vm1 = vmmov 0   ;;  %v440_v1 = vld [vmem:[%s353_s10] sm:$0xf]  ;;  %vm422_vm2 = vcmask 7168  }
  0x9c   : > { %1803 = vsyncadd (%p2404_p1), [#allocation12], 4294967040  ;;  %1444 = vmatprep.subr.bf16.mxu0 %v1838_v0  ;;  %432 = vst.msk [vmem:[#allocation4] sm:$0xff] %vm431_vm0, %v1838_v0  ;;  %1450 = vmatprep.subr.bf16.mxu1 %v1838_v0  ;;  %v441_v2 = vld [vmem:[%s353_s10 + $0x4] sm:$0xf]  ;;  %v453_v3 = vsel %vm431_vm0, %v440_v1, 0 }
  0x9d   : > { %433 = vst.msk [vmem:[#allocation4 + $0x8] sm:$0xff] %vm431_vm0, %v1838_v0  ;;  %434 = vst.msk [vmem:[#allocation4 + $0x10] sm:$0xff] %vm431_vm0, %v1838_v0  ;;  %1446 = vmatprep.mubr.msk.bf16.mxu0 %vm1839_vm1, %v1838_v0  ;;  %1452 = vmatprep.mubr.msk.bf16.mxu1 %vm1839_vm1, %v1838_v0  ;;  %v499_v4 = vsel %vm431_vm0, %v441_v2, 0  ;;  %v442_v5 = vld [vmem:[%s353_s10 + $0x8] sm:$0xf]  ;;  %v1840_v13 = vmov -inf  }
  0x9e   : > { %435 = vst.msk [vmem:[#allocation4 + $0x18] sm:$0xff] %vm431_vm0, %v1838_v0  ;;  %1445 = vmatpush3.bf16.xpose.msra.mxu0 %v453_v3  ;;  %1451 = vmatpush3.bf16.xpose.msra.mxu1 %v499_v4  ;;  %v443_v6 = vld [vmem:[%s353_s10 + $0xc] sm:$0xf]  ;;  %v436_v7 = vld [vmem:[%s2129_s28] sm:$0xf]  ;;  %v545_v9 = vsel %vm431_vm0, %v442_v5, 0 }
  0x9f   : > { %1456 = vmatprep.subr.bf16.mxu0 %v1838_v0  ;;  %1462 = vmatprep.subr.bf16.mxu1 %v1838_v0  ;;  %v437_v8 = vld [vmem:[%s2129_s28 + $0x4] sm:$0xf]  ;;  %v591_v10 = vsel %vm431_vm0, %v443_v6, 0  ;;  %v438_v11 = vld [vmem:[%s2129_s28 + $0x8] sm:$0xf]  ;;  %423 = vst.msk [vmem:[#allocation2] sm:$0xff] %vm422_vm2, %v1840_v13 }
  0xa0   : > { %v439_v12 = vld [vmem:[%s2129_s28 + $0xc] sm:$0xf]  ;;  %424 = vst.msk [vmem:[#allocation2 + $0x8] sm:$0xff] %vm422_vm2, %v1840_v13  ;;  %425 = vst.msk [vmem:[#allocation2 + $0x10] sm:$0xff] %vm422_vm2, %v1840_v13  ;;  %v1841_v34 = vmov 0   ;;  %vm761_vm3 = vcmask 1043456  }
  0xa1   : > { %426 = vst.msk [vmem:[#allocation2 + $0x18] sm:$0xff] %vm422_vm2, %v1840_v13  ;;  %427 = vst.msk [vmem:[#allocation3] sm:$0xff] %vm422_vm2, %v1838_v0  ;;  %1594 = vset.pattern.permute.xlu0 %v1841_v34  ;;  %1595 = vset.pattern.permute.xlu1 %v1841_v34  ;;  %v444_v51 = vld [vmem:[%s2140_s24] sm:$0xf]  ;;  %v445_v53 = vld [vmem:[%s2140_s24 + $0x4] sm:$0xf] }
  0xa2   : > { %428 = vst.msk [vmem:[#allocation3 + $0x8] sm:$0xff] %vm422_vm2, %v1838_v0  ;;  %429 = vst.msk [vmem:[#allocation3 + $0x10] sm:$0xff] %vm422_vm2, %v1838_v0  ;;  %v763_v52 = vsel %vm761_vm3, %v444_v51, 0  ;;  %v809_v54 = vsel %vm761_vm3, %v445_v53, 0  ;;  %v446_v3 = vld [vmem:[%s2140_s24 + $0x8] sm:$0xf] }
  0xa3   : > { %430 = vst.msk [vmem:[#allocation3 + $0x18] sm:$0xff] %vm422_vm2, %v1838_v0  ;;  %s1844_s27 = smov 16   ;;  %s1845_s11 = smov 8   ;;  %vm1143_vm4 = vcmask 130048   ;;  %vm1145_vm5 = vcmask 195584   ;;  %vm1171_vm6 = vcmask 261120  }
  0xa4   : > { %s1846_s7 = smov 24   ;;  %s1403_s20 = sshll.u32 %s2125_s18, 3 }
  0xa5   : > { %1447 = vmatmul.mubr.msk.bf16.vlgmr.msra.gmra.mrb[0].mxu0 %vm431_vm0, %v436_v7  ;;  %1453 = vmatmul.mubr.msk.bf16.vlgmr.msra.gmra.mrb[0].mxu1 %vm431_vm0, %v437_v8  ;;  %v855_v8 = vsel %vm761_vm3, %v446_v3, 0  ;;  %s1419_s14 = sshll.u32 %s1822_s23, 7  ;;  %s410_s25 = scalar_lea.vmem [#allocation13], %s1403_s20 }
  0xa6   : > { %1457 = vmatpush3.bf16.xpose.msra.mxu0 %v545_v9  ;;  %1463 = vmatpush3.bf16.xpose.msra.mxu1 %v591_v10  ;;  %v2206_v35 = vld [vmem:[#allocation2] sm:$0xff]  ;;  %v447_v9 = vld [vmem:[%s2140_s24 + $0xc] sm:$0xf]  ;;  %s1231_s26 = sshll.u32 %s410_s25, 4  ;;  %s2303_s0 = scalar_lea.hbm %s2358_s6, %s1419_s14  ;;  %s2305_s26 = int_to_ptr.vmem [resolvable:$true] %s1231_s26 }
  0xa7   : > { %1458 = vmatprep.mubr.msk.bf16.mxu0 %vm1839_vm1, %v1838_v0  ;;  %1464 = vmatprep.mubr.msk.bf16.mxu1 %vm1839_vm1, %v1838_v0  ;;  %v2211_v38 = vld [vmem:[#allocation2 + $0x8] sm:$0xff]  ;;  %v2221_v42 = vld [vmem:[#allocation2 + $0x10] sm:$0xff]  ;;  %v901_v13 = vsel %vm761_vm3, %v447_v9, 0  ;;  %s1217_s3 = scalar_lea.sflag [#allocation7], %s2125_s18  ;;  %s1740_s23 = scalar_lea.vmem %s2305_s26, 128 }
  0xa8   : > { %1468 = vmatprep.subr.bf16.mxu0 %v1838_v0  ;;  %1474 = vmatprep.subr.bf16.mxu1 %v1838_v0  ;;  %v2231_v46 = vld [vmem:[#allocation2 + $0x18] sm:$0xff]  ;;  %p1741_p2 = scmp.ne.s32.totalorder %s2305_s26, %s1740_s23  ;;  %p2405_p13 = scmp.ne.s32.totalorder %s2390_s13, 0 }
  0xa9   : > { %s1847_s29 = smov [#allocation13]  }
  0xaa   : > { %p1742_p11 = pnand %p1741_p2, %p2405_p13  ;;  %s1744_s17 = sshll.u32 %s1847_s29, 4  ;;  %s1745_s17 = int_to_ptr.vmem [resolvable:$false] %s1744_s17 }
  0xab   : > { %s1746_s1 = scalar_lea.vmem %s1745_s17, 256  ;;  %p1747_p5 = scmp.lt.s32.totalorder %s2305_s26, %s1745_s17 }
  0xac   : > { %p1743_p0 = pneg %p1742_p11  ;;  %p1748_p10 = scmp.lt.s32.totalorder %s1746_s1, %s1740_s23 }
  0xad   : > { %1459 = vmatmul.mubr.msk.bf16.vlgmr.msra.gmra.mrb[4].mxu0 %vm431_vm0, %v438_v11  ;;  %1465 = vmatmul.mubr.msk.bf16.vlgmr.msra.gmra.mrb[4].mxu1 %vm431_vm0, %v439_v12 }
  0xae   : > { %1470 = vmatprep.mubr.msk.bf16.mxu0 %vm1839_vm1, %v1838_v0  ;;  %1476 = vmatprep.mubr.msk.bf16.mxu1 %vm1839_vm1, %v1838_v0  ;;  %p1749_p7 = por %p1748_p10, %p1747_p5 }
  0xaf   : > { %1469 = vmatpush3.bf16.msra.mxu0 %v763_v52  ;;  %1475 = vmatpush3.bf16.msra.mxu1 %v809_v54  ;;  %v726_v52 = vld [vmem:[#allocation4] sm:$0xff] }
  0xb0   : > { %1480 = vmatprep.subr.bf16.mxu0 %v1838_v0  ;;  %1486 = vmatprep.subr.bf16.mxu1 %v1838_v0  ;;  %p1750_p4 = pnand %p1749_p7, %p1743_p0 }
 0x178   : > { %v489_v14 = vpop.f32.mrb[0].mxu0  ;;  %v2196_v15 = vpop.f32.mrb[0].mxu1 }
 0x179   : > { %v1448_v16 = vpop.f32.mrb[1].mxu0  ;;  %v637_v17 = vsel %vm431_vm0, %v489_v14, -inf  ;;  %v1454_v18 = vpop.f32.mrb[1].mxu1  ;;  %v640_v23 = vsel %vm431_vm0, %v2196_v15, -inf }
 0x17a   : > { %638 = vmax.xlane.f32.xlu0 %v637_v17  ;;  %v492_v19 = vpop.f32.mrb[2].mxu0  ;;  %v538_v20 = vpop.f32.mrb[2].mxu1 }
 0x17b   : > { %v1449_v21 = vpop.f32.mrb[3].mxu0  ;;  %v1455_v22 = vpop.f32.mrb[3].mxu1 }
 0x17e   : > { %641 = vmax.xlane.f32.xlu0 %v640_v23 }
 0x180   : > { %v581_v24 = vpop.f32.mrb[4].mxu0  ;;  %v2201_v25 = vpop.f32.mrb[4].mxu1 }
 0x181   : > { %v1460_v26 = vpop.f32.mrb[5].mxu0  ;;  %v643_v27 = vsel %vm431_vm0, %v581_v24, -inf  ;;  %v1466_v28 = vpop.f32.mrb[5].mxu1  ;;  %v646_v33 = vsel %vm431_vm0, %v2201_v25, -inf }
 0x182   : > { %644 = vmax.xlane.f32.xlu1 %v643_v27  ;;  %v584_v29 = vpop.f32.mrb[6].mxu0  ;;  %v630_v30 = vpop.f32.mrb[6].mxu1  ;;  %v697_v28 = vld [vmem:[#allocation3] sm:$0xff] }
 0x183   : > { %v1461_v31 = vpop.f32.mrb[7].mxu0  ;;  %v1467_v32 = vpop.f32.mrb[7].mxu1 }
 0x184   : > { %v698_v31 = vld [vmem:[#allocation3 + $0x8] sm:$0xff] }
 0x186   : > { %647 = vmax.xlane.f32.xlu1 %v646_v33 }
 0x207   : > { %v639_v36 = vpop.xlane.xlu0 %638 }
 0x208   : > { %v2209_v37 = vmax.f32 %v2206_v35, %v639_v36 }
 0x20a   : > { %v653_v39 = vsub.f32 %v2206_v35, %v2209_v37  ;;  %951 = vst.msk [vmem:[#allocation2] sm:$0xff] %vm422_vm2, %v2209_v37  ;;  %667 = vperm.xlu0 %1594, %v2209_v37   ;;  %v699_v35 = vld [vmem:[#allocation3 + $0x10] sm:$0xff] }
 0x20b   : > { %v642_v40 = vpop.xlane.xlu0 %641 }
 0x20c   : > { %v2219_v41 = vmax.f32 %v2211_v38, %v642_v40  ;;  %v657_v21 = vmul.f32 1.442695, %v653_v39  ;;  %v700_v39 = vld [vmem:[#allocation3 + $0x18] sm:$0xff] }
 0x20e   : > { %v654_v43 = vsub.f32 %v2211_v38, %v2219_v41  ;;  %952 = vst.msk [vmem:[#allocation2 + $0x8] sm:$0xff] %vm422_vm2, %v2219_v41  ;;  %672 = vperm.xlu1 %1595, %v2219_v41  }
 0x20f   : > { %v645_v44 = vpop.xlane.xlu1 %644 }
 0x210   : > { %v2229_v45 = vmax.f32 %v2221_v42, %v645_v44  ;;  %v659_v18 = vmul.f32 1.442695, %v654_v43 }
 0x212   : > { %v655_v47 = vsub.f32 %v2221_v42, %v2229_v45  ;;  %953 = vst.msk [vmem:[#allocation2 + $0x10] sm:$0xff] %vm422_vm2, %v2229_v45  ;;  %677 = vperm.xlu1 %1595, %v2229_v45  }
 0x213   : > { %v648_v48 = vpop.xlane.xlu1 %647 }
 0x214   : > { %v2239_v49 = vmax.f32 %v2231_v46, %v648_v48  ;;  %v661_v22 = vmul.f32 1.442695, %v655_v47 }
 0x216   : > { %v656_v50 = vsub.f32 %v2231_v46, %v2239_v49  ;;  %954 = vst.msk [vmem:[#allocation2 + $0x18] sm:$0xff] %vm422_vm2, %v2239_v49  ;;  %682 = vperm.xlu1 %1595, %v2239_v49  }
 0x218   : > { %v663_v23 = vmul.f32 1.442695, %v656_v50 }
 0x289   : > { %v668_v55 = vpop.permute.xlu0 %667 }
 0x28a   : > { %v685_v56 = vsub.f32 %v489_v14, %v668_v55  ;;  %v727_v55 = vld [vmem:[#allocation4 + $0x8] sm:$0xff] }
 0x28c   : > { %v689_v57 = vmul.f32 1.442695, %v685_v56 }
 0x28d   : > { %v673_v58 = vpop.permute.xlu1 %672 }
 0x28e   : > { %1598 = vpow2.f32 %v689_v57  ;;  %v686_v59 = vsub.f32 %v2196_v15, %v673_v58 }
 0x290   : > { %v691_v60 = vmul.f32 1.442695, %v686_v59 }
 0x291   : > { %v678_v61 = vpop.permute.xlu1 %677 }
 0x292   : > { %1600 = vpow2.f32 %v691_v60  ;;  %v687_v62 = vsub.f32 %v581_v24, %v678_v61 }
 0x294   : > { %v693_v63 = vmul.f32 1.442695, %v687_v62 }
 0x295   : > { %v683_v1 = vpop.permute.xlu1 %682 }
 0x296   : > { %1602 = vpow2.f32 %v693_v63  ;;  %v688_v2 = vsub.f32 %v2201_v25, %v683_v1  ;;  %v728_v1 = vld [vmem:[#allocation4 + $0x10] sm:$0xff] }
 0x298   : > { %v1599_v4 = vpop.eup %1598  ;;  %v695_v5 = vmul.f32 1.442695, %v688_v2 }
 0x299   : > { %v705_v6 = vsel %vm431_vm0, %v1599_v4, 0.0  ;;  %v754_v7 = vpack.c.bf16 %v1599_v4, %v1599_v4 }
 0x29a   : > { %1604 = vpow2.f32 %v695_v5  ;;  %706 = vadd.xlane.f32.xlu1 %v705_v6 }
 0x29b   : > { %1471 = vmatmul.mubr.msk.bf16.vlgmr.msra.gmra.mrb[8].mxu0 %vm431_vm0, %v754_v7  ;;  %1606 = vpow2.f32 %v659_v18 }
 0x29c   : > { %v1601_v10 = vpop.eup %1600  ;;  %1481 = vmatpush3.bf16.msra.mxu0 %v855_v8  ;;  %1482 = vmatprep.mubr.msk.bf16.mxu0 %vm1839_vm1, %v1838_v0  ;;  %1608 = vpow2.f32 %v657_v21  ;;  %v729_v8 = vld [vmem:[#allocation4 + $0x18] sm:$0xff] }
 0x29d   : > { %v708_v11 = vsel %vm431_vm0, %v1601_v10, 0.0  ;;  %v755_v12 = vpack.c.bf16 %v1601_v10, %v1601_v10  ;;  %1492 = vmatprep.subr.bf16.mxu0 %v1838_v0  ;;  %1610 = vpow2.f32 %v661_v22  ;;  %v1842_v22 = vmov 1983009808  }
 0x29e   : > { %709 = vadd.xlane.f32.xlu0 %v708_v11  ;;  %1612 = vpow2.f32 %v663_v23  ;;  %v997_v23 = vunpack.c.l.s4 %v1842_v22 }
 0x29f   : > { %1477 = vmatmul.mubr.msk.bf16.vlgmr.msra.gmra.mrb[8].mxu1 %vm431_vm0, %v755_v12 }
 0x2a0   : > { %v1603_v14 = vpop.eup %1602  ;;  %1487 = vmatpush3.bf16.msra.mxu1 %v901_v13  ;;  %1488 = vmatprep.mubr.msk.bf16.mxu1 %vm1839_vm1, %v1838_v0 }
 0x2a1   : > { %v711_v15 = vsel %vm431_vm0, %v1603_v14, 0.0  ;;  %v756_v16 = vpack.c.bf16 %v1603_v14, %v1603_v14 }
 0x2a2   : > { %712 = vadd.xlane.f32.xlu1 %v711_v15 }
 0x2a3   : > { %1483 = vmatmul.mubr.msk.bf16.vlgmr.msra.gmra.mrb[12].mxu0 %vm431_vm0, %v756_v16 }
 0x2a4   : > { %v1605_v17 = vpop.eup %1604  ;;  %1496 = vmatprep.mubr.msk.bf16.mxu0 %vm1839_vm1, %v1838_v0 }
 0x2a5   : > { %v714_v19 = vsel %vm431_vm0, %v1605_v17, 0.0  ;;  %v757_v20 = vpack.c.bf16 %v1605_v17, %v1605_v17  ;;  %v1607_v24 = vpop.eup %1606 }
 0x2a6   : > { %715 = vadd.xlane.f32.xlu1 %v714_v19  ;;  %v1609_v25 = vpop.eup %1608  ;;  %v702_v33 = vmul.f32 %v1607_v24, %v698_v31 }
 0x2a7   : > { %1489 = vmatmul.mubr.msk.bf16.vlgmr.msra.gmra.mrb[12].mxu1 %vm431_vm0, %v757_v20  ;;  %v1611_v26 = vpop.eup %1610  ;;  %v701_v29 = vmul.f32 %v1609_v25, %v697_v28 }
 0x2a8   : > { %v1613_v27 = vpop.eup %1612  ;;  %v703_v37 = vmul.f32 %v1611_v26, %v699_v35 }
 0x2a9   : > { %v704_v42 = vmul.f32 %v1613_v27, %v700_v39 }
 0x2b4   : > { %737 = vperm.xlu0 %1594, %v1607_v24   ;;  %v999_v24 = vlaneseq }
 0x2b6   : > { %v1000_v28 = vshrl.u32 %v999_v24, 7  ;;  %v1414_v24 = vld [vmem:[%s2357_s5] ss:$0 sm:$0xff] }
 0x2b7   : > { %732 = vperm.xlu1 %1595, %v1609_v25  }
 0x2bb   : > { %742 = vperm.xlu1 %1595, %v1611_v26  }
 0x2bf   : > { %747 = vperm.xlu1 %1595, %v1613_v27   ;;  %v998_v27 = vunpack.c.0.s8 %v997_v23 }
 0x327   : > { %v707_v30 = vpop.xlane.xlu1 %706 }
 0x328   : > { %v717_v32 = vadd.f32 %v707_v30, %v701_v29  ;;  %v1843_v30 = vmov 1934713408  }
 0x329   : > { %v1029_v31 = vunpack.c.l.s4 %v1843_v30 }
 0x32a   : > { %722 = vst.msk [vmem:[#allocation3] sm:$0xff] %vm422_vm2, %v717_v32 }
 0x32b   : > { %v710_v34 = vpop.xlane.xlu0 %709 }
 0x32c   : > { %v718_v36 = vadd.f32 %v710_v34, %v702_v33 }
 0x32e   : > { %723 = vst.msk [vmem:[#allocation3 + $0x8] sm:$0xff] %vm422_vm2, %v718_v36  ;;  %v1001_v36 = vsub.s32 %v998_v27, %v1000_v28 }
 0x32f   : > { %v713_v38 = vpop.xlane.xlu1 %712 }
 0x330   : > { %v719_v40 = vadd.f32 %v713_v38, %v703_v37  ;;  %v1030_v37 = vunpack.c.0.s8 %v1029_v31 }
 0x331   : > { %v958_v41 = vld [vmem:[#allocation3] sm:$0xff] }
 0x332   : > { %724 = vst.msk [vmem:[#allocation3 + $0x10] sm:$0xff] %vm422_vm2, %v719_v40  ;;  %1614 = vrcp.f32 %v958_v41 }
 0x333   : > { %v716_v43 = vpop.xlane.xlu1 %715  ;;  %v738_v56 = vpop.permute.xlu0 %737 }
 0x334   : > { %v720_v44 = vadd.f32 %v716_v43, %v704_v42  ;;  %v751_v62 = vmul.f32 %v738_v56, %v727_v55 }
 0x335   : > { %v959_v45 = vld [vmem:[#allocation3 + $0x8] sm:$0xff] }
 0x336   : > { %725 = vst.msk [vmem:[#allocation3 + $0x18] sm:$0xff] %vm422_vm2, %v720_v44  ;;  %1616 = vrcp.f32 %v959_v45 }
 0x337   : > { %v733_v53 = vpop.permute.xlu1 %732 }
 0x338   : > { %v750_v54 = vmul.f32 %v733_v53, %v726_v52 }
 0x339   : > { %v960_v46 = vld [vmem:[#allocation3 + $0x10] sm:$0xff] }
 0x33a   : > { %1618 = vrcp.f32 %v960_v46  ;;  %v1033_v46 = vsub.s32 %v1030_v37, %v1000_v28 }
 0x33b   : > { %v743_v60 = vpop.permute.xlu1 %742 }
 0x33c   : > { %v1615_v47 = vpop.eup %1614  ;;  %v752_v6 = vmul.f32 %v743_v60, %v728_v1  ;;  %v1597_v60 = vld [vmem:[#allocation11 + $0x8] sm:$0xff]  }
 0x33d   : > { %972 = vperm.xlu1 %1595, %v1615_v47   ;;  %v961_v48 = vld [vmem:[#allocation3 + $0x18] sm:$0xff] }
 0x33e   : > { %1620 = vrcp.f32 %v961_v48 }
 0x33f   : > { %v748_v9 = vpop.permute.xlu1 %747 }
 0x340   : > { %v1617_v49 = vpop.eup %1616  ;;  %v753_v14 = vmul.f32 %v748_v9, %v729_v8 }
 0x341   : > { %977 = vperm.xlu0 %1594, %v1617_v49  }
 0x344   : > { %v1619_v50 = vpop.eup %1618 }
 0x345   : > { %982 = vperm.xlu1 %1595, %v1619_v50  }
 0x348   : > { %v1621_v51 = vpop.eup %1620 }
 0x349   : > { %987 = vperm.xlu0 %1594, %v1621_v51   ;;  %v1596_v51 = vld [vmem:[#allocation11] sm:$0xff]  }
 0x34a   : > { %1493 = vmatpush3.bf16.msra.mxu0 %v1596_v51 }
 0x34b   : > { %1494 = vmatprep.subr.bf16.mxu0 %v1838_v0 }
 0x34e   : > { %1495 = vmatpush3.bf16.msra.mxu0 %v1597_v60 }
 0x36e   : > { %v799_v57 = vpop.f32.mrb[8].mxu0 }
 0x36f   : > { %v943_v58 = vadd.f32 %v799_v57, %v750_v54  ;;  %v1472_v59 = vpop.f32.mrb[9].mxu0 }
 0x370   : > { %v802_v61 = vpop.f32.mrb[10].mxu0 }
 0x371   : > { %947 = vst.msk [vmem:[#allocation4] sm:$0xff] %vm431_vm0, %v943_v58  ;;  %v1473_v63 = vpop.f32.mrb[11].mxu0 }
 0x372   : > { %v845_v2 = vpop.f32.mrb[8].mxu1 }
 0x373   : > { %v944_v3 = vadd.f32 %v845_v2, %v751_v62  ;;  %v1478_v4 = vpop.f32.mrb[9].mxu1 }
 0x374   : > { %v848_v5 = vpop.f32.mrb[10].mxu1 }
 0x375   : > { %948 = vst.msk [vmem:[#allocation4 + $0x8] sm:$0xff] %vm431_vm0, %v944_v3  ;;  %v1479_v7 = vpop.f32.mrb[11].mxu1 }
 0x376   : > { %v891_v10 = vpop.f32.mrb[12].mxu0 }
 0x377   : > { %v945_v11 = vadd.f32 %v891_v10, %v752_v6  ;;  %v1484_v12 = vpop.f32.mrb[13].mxu0 }
 0x378   : > { %v894_v13 = vpop.f32.mrb[14].mxu0  ;;  %v966_v33 = vld [vmem:[#allocation4] sm:$0xff] }
 0x379   : > { %949 = vst.msk [vmem:[#allocation4 + $0x10] sm:$0xff] %vm431_vm0, %v945_v11  ;;  %v1485_v15 = vpop.f32.mrb[15].mxu0 }
 0x37a   : > { %v937_v16 = vpop.f32.mrb[12].mxu1 }
 0x37b   : > { %v946_v17 = vadd.f32 %v937_v16, %v753_v14  ;;  %v1490_v18 = vpop.f32.mrb[13].mxu1 }
 0x37c   : > { %v940_v19 = vpop.f32.mrb[14].mxu1  ;;  %v967_v35 = vld [vmem:[#allocation4 + $0x8] sm:$0xff] }
 0x37d   : > { %950 = vst.msk [vmem:[#allocation4 + $0x18] sm:$0xff] %vm431_vm0, %v946_v17  ;;  %v1491_v20 = vpop.f32.mrb[15].mxu1 }
 0x380   : > { %v968_v26 = vld [vmem:[#allocation4 + $0x10] sm:$0xff] }
 0x384   : > { %v969_v39 = vld [vmem:[#allocation4 + $0x18] sm:$0xff] }
 0x3bc   : > { %v973_v21 = vpop.permute.xlu1 %972 }
 0x3bd   : > { %v990_v34 = vmul.f32 %v973_v21, %v966_v33 }
 0x3c0   : > { %v978_v25 = vpop.permute.xlu0 %977 }
 0x3c1   : > { %v991_v40 = vmul.f32 %v978_v25, %v967_v35 }
 0x3c4   : > { %v983_v29 = vpop.permute.xlu1 %982 }
 0x3c5   : > { %v992_v32 = vmul.f32 %v983_v29, %v968_v26 }
 0x3c7   : > { %v994_v41 = vcombine.low %v990_v34, %v992_v32  ;;  %v995_v42 = vcombine.high %v990_v34, %v992_v32 }
 0x3c8   : > { %v988_v38 = vpop.permute.xlu0 %987 }
 0x3c9   : > { %v993_v43 = vmul.f32 %v988_v38, %v969_v39  ;;  %v1002_v47 = vrot.slane %v994_v41, %v1001_v36  ;;  %v1009_v48 = vrot.slane %v995_v42, %v1001_v36 }
 0x3cb   : > { %v1010_v44 = vcombine.low %v991_v40, %v993_v43  ;;  %v1011_v45 = vcombine.high %v991_v40, %v993_v43 }
 0x3cd   : > { %v1018_v49 = vrot.slane %v1010_v44, %v1001_v36  ;;  %v1025_v50 = vrot.slane %v1011_v45, %v1001_v36 }
 0x3cf   : > { %v1026_v52 = vcombine.low %v1002_v47, %v1018_v49  ;;  %v1027_v53 = vcombine.high %v1002_v47, %v1018_v49  ;;  %v1042_v54 = vcombine.low %v1009_v48, %v1025_v50  ;;  %v1043_v55 = vcombine.high %v1009_v48, %v1025_v50 }
 0x3d1   : > { %v1034_v56 = vrot.slane %v1026_v52, %v1033_v46  ;;  %v1041_v57 = vrot.slane %v1027_v53, %v1033_v46  ;;  %v1050_v58 = vrot.slane %v1042_v54, %v1033_v46  ;;  %v1057_v59 = vrot.slane %v1043_v55, %v1033_v46 }
 0x3d3   : > { %v1062_v61 = vcombine.low %v1034_v56, %v1041_v57  ;;  %v1412_v62 = vcombine.high %v1034_v56, %v1041_v57  ;;  %v1078_v63 = vcombine.low %v1050_v58, %v1057_v59  ;;  %v1413_v1 = vcombine.high %v1050_v58, %v1057_v59 }
 0x3d5   : > { %v1069_v2 = vrot.slane %v1062_v61, %v1001_v36  ;;  %v1077_v3 = vrot.slane %v1412_v62, %v1001_v36  ;;  %v1085_v4 = vrot.slane %v1078_v63, %v1001_v36  ;;  %v1093_v5 = vrot.slane %v1413_v1, %v1001_v36 }
 0x3d7   : > { %v1095_v6 = vcombine.high %v1069_v2, %v1077_v3  ;;  %v1111_v7 = vcombine.high %v1085_v4, %v1093_v5  ;;  %v1094_v8 = vcombine.low %v1069_v2, %v1077_v3  ;;  %v1110_v9 = vcombine.low %v1085_v4, %v1093_v5 }
 0x3d9   : > { %v1109_v10 = vrot.slane %v1095_v6, %v1033_v46  ;;  %v1125_v11 = vrot.slane %v1111_v7, %v1033_v46  ;;  %v1102_v12 = vrot.slane %v1094_v8, %v1033_v46  ;;  %v1118_v13 = vrot.slane %v1110_v9, %v1033_v46 }
 0x3db   : > { %v1128_v14 = vcombine.low %v1109_v10, %v1125_v11  ;;  %v1127_v0 = vcombine.high %v1102_v12, %v1118_v13  ;;  %v1126_v15 = vcombine.low %v1102_v12, %v1118_v13  ;;  %v1129_v16 = vcombine.high %v1109_v10, %v1125_v11 }
 0x3dd   : > { %1135 = vrot.lane.b32.xlu0 %v1128_v14, %s1844_s27  ;;  %1131 = vrot.lane.b32.xlu1 %v1127_v0, %s1845_s11 }
 0x3e1   : > { %1139 = vrot.lane.b32.xlu1 %v1129_v16, %s1846_s7 }
 0x44f   : > { %v1132_v17 = vpop.permute.xlu1 %1131  ;;  %v1136_v18 = vpop.permute.xlu0 %1135 }
 0x450   : > { %v1142_v19 = vsel %vm431_vm0, %v1126_v15, %v1132_v17 }
 0x451   : > { %v1144_v21 = vsel %vm1143_vm4, %v1142_v19, %v1136_v18 }
 0x453   : > { %v1140_v20 = vpop.permute.xlu1 %1139 }
 0x454   : > { %v1146_v22 = vsel %vm1145_vm5, %v1144_v21, %v1140_v20 }
 0x455   : > { %v1147_v23 = vpack.c.bf16 %v1146_v22, %v1146_v22 }
 0x457   : > { %1497 = vmatmul.mubr.msk.bf16.vlgmr.msra.gmra.mrb[16].mxu0 %vm1171_vm6, %v1147_v23 }
 0x52a   : > { %v1209_v25 = vpop.f32.mrb[16].mxu0 }
 0x52b   : > { %v1210_v26 = vadd.f32 %v1414_v24, %v1209_v25  ;;  %v1498_v27 = vpop.f32.mrb[17].mxu0 }
 0x52c   : > { %v1212_v28 = vpop.f32.mrb[18].mxu0 }
 0x52d   : > { %v1499_v29 = vpop.f32.mrb[19].mxu0  ;;  %1215 = vst.msk [vmem:[%s410_s25] sm:$0xff] %vm1171_vm6, %v1210_v26 }
 0x52e   : > { %1753 = shalt.err (!%p1750_p4)
}
 0x52f   : > { %s1754_s18 = scalar_lea.hbm %s2303_s0, 128  ;;  %s1758_s16 = scalar_lea.hbm %s2358_s6, 256 }
 0x530   : > { %p1755_p3 = scmp.ne.s32.totalorder %s2303_s0, %s1754_s18  ;;  %p1759_p8 = scmp.lt.u32.totalorder %s2303_s0, %s2358_s6 }
 0x531   : > { %p1760_p12 = scmp.lt.u32.totalorder %s1758_s16, %s1754_s18  ;;  %p1762_p2 = scmp.lt.u32.totalorder %s1754_s18, %s2303_s0 }
 0x532   : > { %p1756_p6 = pnand %p1755_p3, %p2405_p13 }
 0x533   : > { %p1761_p1 = por %p1760_p12, %p1759_p8 }
 0x534   : > { %p1757_p9 = pneg %p1756_p6 }
 0x535   : > { %p1763_p11 = por %p1762_p2, %p1761_p1 }
 0x537   : > { %p1764_p0 = pnand %p1763_p11, %p1757_p9 }
 0x539   : > { %1767 = shalt.err (!%p1764_p0)
}
 0x53a   : > { %1510 = dma.vmem_to_hbm [thread:$0]  (%p2405_p13), %s2305_s26, 128, %s2303_s0, %s1217_s3  }
 0x53b PF: > { %s2406_s27 = sld [smem:[#allocation20_spill]]  ;;  %s1243_s11 = sand.u32 1, %s1810_s21  }
 0x53c   : > { %p2407_p5 = scmp.ne.s32.totalorder %s2391_s15, 0  ;;  %s1244_s7 = scalar_lea.sflag [#allocation7], %s1243_s11 }
 0x541   : > { %p2408_p10 = scmp.ge.s32.totalorder %s2406_s27, 2 }
 0x543   : > { %p1527_p7 = pnand %p2408_p10, %p2407_p5 }
 0x545   : > { %1805 = dma.done.wait (!%p1527_p7), %s1244_s7, 128  }
 0x546   : > { %1807 = vsyncadd (!%p1527_p7), %s1244_s7, 4294967168  ;;  %s26_s25 = sadd.s32 1, %s2406_s27   ;;  %s2409_s20 = sld [smem:[#allocation18_spill]] }
 0x547   : > { %p23_p4 = scmp.ge.s32.totalorder %s26_s25, 4   ;;  %s2410_s3 = sld [smem:[#allocation22_spill]] }
 0x548   : > { %s2411_s23 = sld [smem:[#allocation19_spill]]  ;;  %s2412_s24 = sld [smem:[#allocation21_spill]] }
 0x549   : > { %s2413_s21 = smov %s1814_s22  ;;  %25 = sbr.rel (!%p23_p4) target bundleno = 12 (0xc), region = 128 }
 0x54c   : > { %s2414_s22 = smov %s2409_s20 }
 0x550   :  { %1249 = vsyncpa [#allocation6], 1 }
 0x551   :  { %1251 = vsyncpa [#allocation6 + $0x1], 1 }
 0x552   :  { %1252 = vsyncpa [#allocation9], 1 }
 0x553   :  { %1254 = vsyncpa [#allocation9 + $0x1], 1 }
 0x554   :  { %1255 = vsyncpa [#allocation12], 1 }
 0x555   :  { %1256 = vsyncpa [#allocation7], 1 }
 0x556   :  { %1258 = vsyncpa [#allocation7 + $0x1], 1 }

</bundles_post_ra>
